<compile_context>
chip_gen: v5e
topology: v5e:2x2
jax: 0.10.0
libtpu: 0.0.40
codegen_flags: <defaults>
</compile_context>

<pallas_src>
import functools

import jax
import jax.numpy as jnp
from jax.experimental import pallas as pl
from jax.experimental.pallas import tpu as pltpu


# ---------------------------------------------------------------------------
# Generation-aware VMEM budgets
# ---------------------------------------------------------------------------
@functools.lru_cache(maxsize=None)
def _vmem_limit_bytes():
    """Scoped VMEM limit: ~75% of physical VMEM, capped at 100 MiB.
    v5e/v6e (128 MiB physical) -> 96 MiB, v7x (64 MiB) -> 48 MiB.
    Conservative fallback (64 MiB physical) if the query is unavailable."""
    cap = 64 * 1024 * 1024
    try:
        info = pltpu.get_tpu_info()
        cap = int(getattr(info, "vmem_capacity_bytes", cap))
    except Exception:
        pass
    return int(min(cap * 3 // 4, 100 * 1024 * 1024))


@functools.lru_cache(maxsize=None)
def _compiler_params():
    return pltpu.CompilerParams(
        dimension_semantics=("arbitrary",),
        vmem_limit_bytes=_vmem_limit_bytes(),
    )


def _choose_tk(M, K, itemsize):
    """Largest K tile (multiple of 128, capped at 64K columns) such that up
    to 3 input pipeline buffers of (M, tk) plus the (M, M)-sized residents
    fit under the scoped VMEM limit of the current TPU generation."""
    vmem_limit = _vmem_limit_bytes()
    k128 = max(128, ((K + 127) // 128) * 128)
    resident = 4 * (M * M * 4) + (2 << 20)      # (M,M) f32 residents + headroom
    budget = max(vmem_limit - resident, 4 << 20)
    nbuf = 3                                    # up to 3-deep input buffering
    max_cols = budget // (nbuf * max(M, 8) * itemsize)
    tk = min(65536, (max_cols // 128) * 128, k128)
    return max(int(tk), 128)


def _prep_features(x, max_tk=None):
    """NCHW -> (M, K) features (no padded copy), K-tiling params, gram scale."""
    a, b, c, d = x.shape
    M, K = a * b, c * d
    feats = x.reshape(M, K)        # keep input dtype (bf16 stays bf16 on MXU)
    tk = _choose_tk(M, K, feats.dtype.itemsize)
    if max_tk is not None:         # test hook: force the tiled / masked path
        tk = max(128, (min(tk, max_tk) // 128) * 128)
    if tk >= K:
        tk, n_k, rem = K, 1, 0     # single full-K block, no mask needed
    else:
        n_k = (K + tk - 1) // tk
        rem = K % tk               # ragged tail, masked in-kernel
    scale = 1.0 / float(a * b * c * d)
    return feats, M, K, tk, n_k, rem, scale


def _x_block_spec(M, tk, n_k):
    """Feature-matrix BlockSpec; 3-deep pipelining whenever the reduction is
    long enough (the tk budget already accounts for 3 buffers)."""
    if n_k >= 3:
        return pl.BlockSpec((M, tk), lambda k: (0, k),
                            pipeline_mode=pl.Buffered(3))
    return pl.BlockSpec((M, tk), lambda k: (0, k))


def _target_spec(M):
    """Target-gram BlockSpec; single-buffer it when it is big enough to
    matter (constant index map, only read in the finalize branch)."""
    if M * M * 4 >= (1 << 20):
        return pl.BlockSpec((M, M), lambda k: (0, 0),
                            pipeline_mode=pl.Buffered(1))
    return pl.BlockSpec((M, M), lambda k: (0, 0))


def _masked_tile(x_ref, rem):
    """Load the current (M, tk) tile; zero the out-of-range lanes of the
    ragged last K block (boundary-block columns are undefined)."""
    x = x_ref[...]
    if rem:
        k = pl.program_id(0)
        limit = jnp.where(k == pl.num_programs(0) - 1, rem, x.shape[1])
        lane = jax.lax.broadcasted_iota(jnp.int32, x.shape, 1)
        x = jnp.where(lane < limit, x, jnp.zeros_like(x))
    return x


# ---------------------------------------------------------------------------
# Gram-matrix kernel:  G = scale * (X @ X^T)
# Accumulates directly into the resident output block (no scratch).
# ---------------------------------------------------------------------------
def _gram_kernel(x_ref, g_ref, *, scale, rem):
    k = pl.program_id(0)

    @pl.when(k == 0)
    def _init():
        g_ref[...] = jnp.zeros_like(g_ref)

    x = _masked_tile(x_ref, rem)
    # X @ X^T without materializing a transpose: contract the last dims.
    g_ref[...] += jax.lax.dot_general(
        x, x,
        dimension_numbers=(((1,), (1,)), ((), ())),
        preferred_element_type=jnp.float32,
    )

    @pl.when(k == pl.num_programs(0) - 1)
    def _finalize():
        g_ref[...] = g_ref[...] * scale


def gram_matrix_pallas(x, *, max_tk=None):
    """x: (a, b, c, d) NCHW -> gram matrix (a*b, a*b) in f32."""
    feats, M, K, tk, n_k, rem, scale = _prep_features(x, max_tk)
    kernel = functools.partial(_gram_kernel, scale=scale, rem=rem)
    return pl.pallas_call(
        kernel,
        out_shape=jax.ShapeDtypeStruct((M, M), jnp.float32),
        grid_spec=pltpu.PrefetchScalarGridSpec(
            num_scalar_prefetch=0,
            grid=(n_k,),
            in_specs=[_x_block_spec(M, tk, n_k)],
            out_specs=pl.BlockSpec((M, M), lambda k: (0, 0)),
        ),
        compiler_params=_compiler_params(),
    )(feats)


# ---------------------------------------------------------------------------
# Fused gram + MSE kernel:  loss = mean((scale * X @ X^T - target)^2)
# Gram accumulates in a VMEM scratch; only the scalar loss is written (SMEM).
# ---------------------------------------------------------------------------
def _gram_mse_kernel(x_ref, t_ref, loss_ref, acc_ref, *, scale, inv_n, rem):
    k = pl.program_id(0)

    @pl.when(k == 0)
    def _init():
        acc_ref[...] = jnp.zeros_like(acc_ref)

    x = _masked_tile(x_ref, rem)
    acc_ref[...] += jax.lax.dot_general(
        x, x,
        dimension_numbers=(((1,), (1,)), ((), ())),
        preferred_element_type=jnp.float32,
    )

    @pl.when(k == pl.num_programs(0) - 1)
    def _finalize():
        diff = acc_ref[...] * scale - t_ref[...]
        loss_ref[0, 0] = jnp.sum(diff * diff) * inv_n


def _style_loss_impl(x, target_gram, max_tk=None):
    """Fused forward: scalar mse(gram(x), target_gram)."""
    feats, M, K, tk, n_k, rem, scale = _prep_features(x, max_tk)
    kernel = functools.partial(_gram_mse_kernel, scale=scale,
                               inv_n=1.0 / float(M * M), rem=rem)
    loss = pl.pallas_call(
        kernel,
        out_shape=jax.ShapeDtypeStruct((1, 1), jnp.float32),
        grid_spec=pltpu.PrefetchScalarGridSpec(
            num_scalar_prefetch=0,
            grid=(n_k,),
            in_specs=[
                _x_block_spec(M, tk, n_k),
                _target_spec(M),
            ],
            # Scalar loss lives in SMEM: avoids a lane-sparse masked VMEM store.
            out_specs=pl.BlockSpec(memory_space=pltpu.MemorySpace.SMEM),
            scratch_shapes=[pltpu.VMEM((M, M), jnp.float32)],
        ),
        compiler_params=_compiler_params(),
    )(feats, target_gram.astype(jnp.float32))
    return loss[0, 0]


# custom VJP: grad of mean((s*X X^T - T)^2) wrt X is (4*s/M^2) * (G - T) @ X.
@jax.custom_vjp
def style_loss_pallas(x, target_gram):
    return _style_loss_impl(x, target_gram)


def _style_loss_fwd(x, target_gram):
    return _style_loss_impl(x, target_gram), (x, target_gram)


def _style_loss_bwd(res, g):
    x, target_gram = res
    a, b, c, d = x.shape
    M, K = a * b, c * d
    s = 1.0 / float(a * b * c * d)
    feats = x.reshape(M, K).astype(jnp.float32)
    G = gram_matrix_pallas(x)                           # (M, M) f32
    D = G - target_gram.astype(jnp.float32)
    gx = ((4.0 * s / (M * M)) * jnp.dot(D, feats)) * g  # (M, K)
    gx = gx.reshape(a, b, c, d).astype(x.dtype)
    gt = ((-2.0 / (M * M)) * D * g).astype(target_gram.dtype)
    return gx, gt


style_loss_pallas.defvjp(_style_loss_fwd, _style_loss_bwd)


# ---------------------------------------------------------------------------
# StyleLoss2 module equivalent
# ---------------------------------------------------------------------------
class StyleLoss2:
    def __init__(self, target_feature):
        # target = gram_matrix(target_feature).detach()
        self.target = jax.lax.stop_gradient(gram_matrix_pallas(target_feature))
        self.loss = None

    def forward(self, x):
        # PyTorch returns `input` and stashes self.loss; we return both.
        self.loss = style_loss_pallas(x, self.target)
        return x, self.loss

    __call__ = forward


if __name__ == "__main__":
    key = jax.random.PRNGKey(0)
    k1, k2, k3, k4 = jax.random.split(key, 4)

    def gram_ref(t):
        a, b, c, d = t.shape
        f = t.reshape(a * b, c * d).astype(jnp.float32)
        return (f @ f.T) / (a * b * c * d)

    # Case 1: NCHW (2, 4, 16, 16) -- K = 256, single full-K block.
    target_feature = jax.random.normal(k1, (2, 4, 16, 16), dtype=jnp.float32)
    x = jax.random.normal(k2, (2, 4, 16, 16), dtype=jnp.float32)

    module = StyleLoss2(target_feature)
    out, loss = module(x)
    jax.block_until_ready(out)
    jax.block_until_ready(loss)

    loss_ref = jnp.mean((gram_ref(x) - gram_ref(target_feature)) ** 2)
    assert jnp.allclose(out, x)
    assert jnp.allclose(loss, loss_ref, rtol=1e-5, atol=1e-6), (loss, loss_ref)

    # Gradient wrt the input image (canonical style-transfer use).
    g_pallas = jax.grad(lambda xx: style_loss_pallas(xx, module.target))(x)
    g_ref = jax.grad(lambda xx: jnp.mean((gram_ref(xx) - module.target) ** 2))(x)
    jax.block_until_ready(g_pallas)
    assert jnp.allclose(g_pallas, g_ref, rtol=1e-4, atol=1e-8), (
        float(jnp.max(jnp.abs(g_pallas - g_ref))))

    # Case 2: NCHW (2, 4, 15, 15) -- unaligned K = 225, single (M, K) block.
    tf2 = jax.random.normal(k3, (2, 4, 15, 15), dtype=jnp.float32)
    x2 = jax.random.normal(k4, (2, 4, 15, 15), dtype=jnp.float32)
    module2 = StyleLoss2(tf2)
    out2, loss2 = module2(x2)
    jax.block_until_ready(loss2)
    loss2_ref = jnp.mean((gram_ref(x2) - gram_ref(tf2)) ** 2)
    assert jnp.allclose(out2, x2)
    assert jnp.allclose(loss2, loss2_ref, rtol=1e-5, atol=1e-6), (loss2, loss2_ref)

    # Case 3: force the tiled K-reduction with a ragged last block
    # (tk=128, n_k=2, rem=97) to exercise the in-kernel boundary mask.
    g_tiled = gram_matrix_pallas(x2, max_tk=128)
    jax.block_until_ready(g_tiled)
    assert jnp.allclose(g_tiled, gram_ref(x2), rtol=1e-5, atol=1e-6)
    loss_tiled = _style_loss_impl(x2, module2.target, max_tk=128)
    jax.block_until_ready(loss_tiled)
    assert jnp.allclose(loss_tiled, loss2_ref, rtol=1e-5, atol=1e-6), (
        loss_tiled, loss2_ref)

    print("KERNEL_OK")
</pallas_src>

<mosaic_0001>
module attributes {stable_mosaic.version = 11 : i64} {
  func.func @_gram_kernel(%arg0: i32, %arg1: memref<8x256xf32, #tpu.memory_space<vmem>>, %arg2: memref<8x8xf32, #tpu.memory_space<vmem>>) attributes {dimension_semantics = [#tpu.dimension_semantics<arbitrary>], iteration_bounds = array<i64: 1>, scalar_prefetch = 0 : i64, scratch_operands = 0 : i64, tpu.core_type = #tpu.core_type<tc>, window_params = [{transform_indices = @transform_0, window_bounds = array<i64: 8, 256>}, {pipeline_mode = #tpu.pipeline_mode<synchronous>, transform_indices = @transform_1, window_bounds = array<i64: 8, 8>}]} {
    %c0_i32 = arith.constant 0 : i32
    %0 = arith.cmpi eq, %arg0, %c0_i32 : i32
    %1 = arith.extui %0 : i1 to i32
    %c0_i32_0 = arith.constant 0 : i32
    %2 = arith.cmpi ne, %1, %c0_i32_0 : i32
    scf.if %2 {
      %cst_8 = arith.constant 0.000000e+00 : f32
      %11 = vector.broadcast %cst_8 : f32 to vector<8x8xf32>
      %c0_9 = arith.constant 0 : index
      %c0_10 = arith.constant 0 : index
      %12 = vector.load %arg2[%c0_9, %c0_10] : memref<8x8xf32, #tpu.memory_space<vmem>>, vector<8x8xf32>
      tpu.vector_store %arg2[%c0_9, %c0_10], %11 {strides = array<i32>} : memref<8x8xf32, #tpu.memory_space<vmem>>, vector<8x8xf32>,
    } else {
    }
    %c0 = arith.constant 0 : index
    %c0_1 = arith.constant 0 : index
    %3 = vector.load %arg1[%c0, %c0_1] : memref<8x256xf32, #tpu.memory_space<vmem>>, vector<8x256xf32>
    %c0_2 = arith.constant 0 : index
    %c0_3 = arith.constant 0 : index
    %4 = vector.load %arg2[%c0_2, %c0_3] : memref<8x8xf32, #tpu.memory_space<vmem>>, vector<8x8xf32>
    %cst = arith.constant dense<0.000000e+00> : vector<8x8xf32>
    %5 = tpu.matmul %3, %3, %cst {dimension_numbers = #tpu.dot_dimension_numbers<[1], [1], [0], [0], [0, 0, 1, 0], [], []>} : vector<8x256xf32>, vector<8x256xf32>, vector<8x8xf32> -> vector<8x8xf32>
    %6 = arith.addf %4, %5 : vector<8x8xf32>
    %c0_4 = arith.constant 0 : index
    %c0_5 = arith.constant 0 : index
    %7 = vector.load %arg2[%c0_4, %c0_5] : memref<8x8xf32, #tpu.memory_space<vmem>>, vector<8x8xf32>
    tpu.vector_store %arg2[%c0_4, %c0_5], %6 {strides = array<i32>} : memref<8x8xf32, #tpu.memory_space<vmem>>, vector<8x8xf32>,
    %c0_i32_6 = arith.constant 0 : i32
    %8 = arith.cmpi eq, %arg0, %c0_i32_6 : i32
    %9 = arith.extui %8 : i1 to i32
    %c0_i32_7 = arith.constant 0 : i32
    %10 = arith.cmpi ne, %9, %c0_i32_7 : i32
    scf.if %10 {
      %c0_8 = arith.constant 0 : index
      %c0_9 = arith.constant 0 : index
      %11 = vector.load %arg2[%c0_8, %c0_9] : memref<8x8xf32, #tpu.memory_space<vmem>>, vector<8x8xf32>
      %cst_10 = arith.constant 4.8828125E-4 : f32
      %12 = vector.broadcast %cst_10 : f32 to vector<8x8xf32>
      %13 = arith.mulf %11, %12 : vector<8x8xf32>
      %c0_11 = arith.constant 0 : index
      %c0_12 = arith.constant 0 : index
      %14 = vector.load %arg2[%c0_11, %c0_12] : memref<8x8xf32, #tpu.memory_space<vmem>>, vector<8x8xf32>
      tpu.vector_store %arg2[%c0_11, %c0_12], %13 {strides = array<i32>} : memref<8x8xf32, #tpu.memory_space<vmem>>, vector<8x8xf32>,
    } else {
    }
    return
  }
  func.func @transform_0(%arg0: i32) -> (i32, i32) {
    %c0_i32 = arith.constant 0 : i32
    %c0_i32_0 = arith.constant 0 : i32
    return %c0_i32, %arg0 : i32, i32
  }
  func.func @transform_1(%arg0: i32) -> (i32, i32) {
    %c0_i32 = arith.constant 0 : i32
    %c0_i32_0 = arith.constant 0 : i32
    %c0_i32_1 = arith.constant 0 : i32
    return %c0_i32, %c0_i32_0 : i32, i32
  }
}

</mosaic_0001>

<bundles_post_ra>
// kernel: tpu_custom_call.1
= control target key start
LH: loop header
LB: loop body
LE: loop exit
PB: predicated region body
PF: predicated region fallthrough
CT: control target
= control target key end

     0   :  { %6 = vsyncpa [#allocation3], 0  ;;  %s175_s0 = inlined_call_operand.hbm [shape: f32[8,256], index: 0, kind: input, shape index: {}]   ;;  %s176_s1 = inlined_call_operand.hbm [shape: f32[8,8], index: 1, kind: output, shape index: {}]  }
   0x1   :  { %7 = vsyncpa [#allocation4], 0  ;;  %s13_s8 = sshll.u32 %s175_s0, 4  ;;  %s153_s9 = smov [#allocation2]   ;;  %s14_s8 = int_to_ptr.hbm [resolvable:$true] %s13_s8 }
   0x2   :  { %s15_s10 = sshll.u32 %s153_s9, 4  ;;  %s16_s10 = int_to_ptr.vmem [resolvable:$true] %s15_s10 }
   0x3   :  { %18 = dma.hbm_to_vmem [thread:$0]  %s14_s8, 256, %s16_s10, [#allocation3]  }
   0x4   :  { %149 = dma.done.wait [#allocation3], 256  }
   0x5   :  { %150 = vsyncadd [#allocation3], 4294967040  ;;  %v29_v0 = vld [vmem:[#allocation2] sm:$0xff]  ;;  %v30_v1 = vld [vmem:[#allocation2 + $0x8] sm:$0xff]  ;;  %vm27_vm0 = vcmask 64512   ;;  %v154_v2 = vmov 0.0  }
   0x6   :  { %47 = vmatpush.xpose.msra.mxu0 %v29_v0  ;;  %67 = vmatpush.xpose.msra.mxu1 %v30_v1  ;;  %28 = vst.msk [vmem:[#allocation5] sm:$0xff] %vm27_vm0, %v154_v2  ;;  %s155_s0 = smov [#allocation5]   ;;  %s88_s14 = sshll.u32 %s176_s1, 4  ;;  %s89_s14 = int_to_ptr.hbm [resolvable:$true] %s88_s14 }
   0x7   :  { %s86_s11 = sshll.u32 %s155_s0, 4  ;;  %s87_s11 = int_to_ptr.vmem [resolvable:$true] %s86_s11 }
   0x9   :  { %48 = vmatmul.f32.vlgmr.msra.gmra.mxu0 %v29_v0  ;;  %68 = vmatmul.f32.vlgmr.msra.gmra.mxu1 %v30_v1 }
   0xd   :  { %v31_v4 = vld [vmem:[#allocation5] sm:$0xff] }
  0x86   :  { %v49_v3 = vpop.f32.mrf.mxu0  ;;  %v69_v5 = vpop.f32.mrf.mxu1 }
  0x87   :  { %v70_v6 = vadd.f32 %v69_v5, %v49_v3 }
  0x89   :  { %v72_v7 = vadd.f32 %v70_v6, %v31_v4 }
  0x8b   :  { %74 = vst.msk [vmem:[#allocation5] sm:$0xff] %vm27_vm0, %v72_v7 }
  0x92   :  { %v78_v8 = vld [vmem:[#allocation5] sm:$0xff] }
  0x93   :  { %v79_v9 = vmul.f32 0.00048828125, %v78_v8 }
  0x95   :  { %80 = vst.msk [vmem:[#allocation5] sm:$0xff] %vm27_vm0, %v79_v9 }
  0x96   :  { %91 = dma.vmem_to_hbm [thread:$0]  %s87_s11, 128, %s89_s14, [#allocation4]  }
  0x97   :  { %151 = dma.done.wait [#allocation4], 128  }
  0x98   :  { %152 = vsyncadd [#allocation4], 4294967168 }
  0x99   :  { %96 = vsyncpa [#allocation3], 1 }
  0x9a   :  { %97 = vsyncpa [#allocation4], 1 }

</bundles_post_ra>
